<compile_context>
chip_gen: v7x
topology: tpu7x:2x2x1
jax: 0.10.0
libtpu: 0.0.40
codegen_flags: <defaults>
</compile_context>

<pallas_src>
import jax
import jax.numpy as jnp
import numpy as np
from jax.experimental import pallas as pl
from jax.experimental.pallas import tpu as pltpu

N_A = 32          # n_a
N_S = 64          # n_s
HID = 10          # hidden width of the small attention MLP


def attention_kernel(s_ref, a_ref, w1s_ref, w1a_ref, b1_ref, w2_ref, b2_ref, o_ref):
    # s_ref:  (BM, n_s)           batch-block of s_prev
    # a_ref:  (BM, Tx, 2*n_a)     batch-block of a, in its storage dtype (f32 or bf16)
    # w1s_ref:(n_s, HID)  w1a_ref:(2*n_a, HID)  (w1a matches a's dtype for native MXU)
    # b1_ref: (1, HID)    w2_ref:(1, HID)       b2_ref:(1,) in SMEM
    # o_ref:  (BM, 2*n_a)
    bm, tx, two_na = a_ref.shape
    hid = w1a_ref.shape[1]

    a = a_ref[...]                                   # storage dtype (bf16 stays bf16)
    a_f32 = a.astype(jnp.float32)

    # s-path hoisted: one matmul per block, broadcast over Tx below.
    sh = jnp.dot(s_ref[...].astype(jnp.float32), w1s_ref[...],
                 preferred_element_type=jnp.float32) + b1_ref[...]          # (BM, HID)

    # a-path: one big MXU matmul with M = BM*Tx (instead of M = Tx per row).
    ha = jnp.dot(a.reshape(bm * tx, two_na), w1a_ref[...],
                 preferred_element_type=jnp.float32)                        # (BM*Tx, HID)

    h = jnp.tanh(ha.reshape(bm, tx, hid) + sh[:, None, :])                  # (BM, Tx, HID)

    # Linear2 on VPU (broadcast-mul) + XLU (lane reduce); N=1 MXU matmul would waste it.
    logits = jnp.sum(h * w2_ref[...][None], axis=-1, keepdims=True) + b2_ref[0]
    e = jnp.maximum(logits, 0.0)                                            # (BM, Tx, 1)

    # Softmax over the size-1 last dim (dim=2 in the PyTorch module) -> alpha == 1,
    # computed faithfully anyway (cheap, hidden under the mem-bound read of `a`).
    emax = jnp.max(e, axis=-1, keepdims=True)
    p = jnp.exp(e - emax)
    alpha = p / jnp.sum(p, axis=-1, keepdims=True)                          # (BM, Tx, 1)

    # WeightedSum over Tx.
    ctx = jnp.sum(alpha * a_f32, axis=1)                                    # (BM, 2*n_a)
    o_ref[...] = ctx.astype(o_ref.dtype)


def _pick_block_m(m, Tx, two_na, itemsize):
    # Target ~1 MiB of `a` per block (kernel is HBM-bandwidth bound), rows a multiple
    # of 8 (sublane tiling); conservative enough for v5e/v6e/v7x scoped-VMEM budgets.
    target_bytes = 1 << 20
    bytes_per_row = Tx * two_na * itemsize
    bm = max(8, min(1024, target_bytes // max(1, bytes_per_row)))
    bm = (bm // 8) * 8
    return m if m <= bm else bm


def attention_block(s_prev, a, w1, b1, w2, b2, *, block_m=None):
    """s_prev: (1, m, n_s); a: (m, Tx, 2*n_a). Returns (m, 1, 2*n_a) float32."""
    m, Tx, two_na = a.shape
    s2d = s_prev.reshape(m, N_S)                     # keep input dtype; cast in-kernel

    # Parameter plumbing (tiny, one-time): split W1 into s-part and a-part so the kernel
    # needs no concatenate; w1a matches a's dtype so the MXU runs natively (bf16 ok).
    w1t = w1.T                                        # (n_s + 2*n_a, HID)
    w1t_s = jnp.asarray(w1t[:N_S], jnp.float32)       # (n_s, HID)
    w1t_a = jnp.asarray(w1t[N_S:], a.dtype)           # (2*n_a, HID)
    b1_2d = jnp.asarray(b1.reshape(1, HID), jnp.float32)
    w2_row = jnp.asarray(w2.reshape(1, HID), jnp.float32)
    b2_s = jnp.asarray(b2.reshape(1), jnp.float32)    # scalar -> SMEM

    if block_m is None:
        block_m = _pick_block_m(m, Tx, two_na, a.dtype.itemsize)
    block_m = min(block_m, m)
    grid_m = pl.cdiv(m, block_m)

    out = pl.pallas_call(
        attention_kernel,
        out_shape=jax.ShapeDtypeStruct((m, two_na), jnp.float32),
        grid_spec=pltpu.PrefetchScalarGridSpec(
            num_scalar_prefetch=0,
            grid=(grid_m,),
            in_specs=[
                pl.BlockSpec((block_m, N_S), lambda i: (i, 0)),
                pl.BlockSpec((block_m, Tx, two_na), lambda i: (i, 0, 0)),
                pl.BlockSpec((N_S, HID), lambda i: (0, 0)),
                pl.BlockSpec((two_na, HID), lambda i: (0, 0)),
                pl.BlockSpec((1, HID), lambda i: (0, 0)),
                pl.BlockSpec((1, HID), lambda i: (0, 0)),
                pl.BlockSpec(memory_space=pltpu.MemorySpace.SMEM),
            ],
            out_specs=pl.BlockSpec((block_m, two_na), lambda i: (i, 0)),
        ),
        compiler_params=pltpu.CompilerParams(
            dimension_semantics=("parallel",),
            vmem_limit_bytes=32 * 1024 * 1024,
        ),
    )(s2d, a, w1t_s, w1t_a, b1_2d, w2_row, b2_s)
    return out.reshape(m, 1, two_na)


def reference(s_prev, a, w1, b1, w2, b2):
    m, Tx, _ = a.shape
    a32 = a.astype(jnp.float32)
    s = s_prev.reshape(m, N_S).astype(jnp.float32)
    s_rep = jnp.broadcast_to(s[:, None, :], (m, Tx, N_S))
    concat = jnp.concatenate([s_rep, a32], axis=2)
    h = jnp.tanh(concat @ w1.T + b1)
    e = jnp.maximum(h @ w2.T + b2, 0.0)
    alpha = jax.nn.softmax(e, axis=2)   # softmax over size-1 dim, as in the module
    return jnp.sum(alpha * a32, axis=1).reshape(m, 1, -1)


if __name__ == "__main__":
    key = jax.random.PRNGKey(0)
    k_s, k_a, k_w1, k_b1, k_w2, k_b2 = jax.random.split(key, 6)

    # Deterministic params (same shapes as nn.Linear(128,10) / nn.Linear(10,1)).
    in1 = N_S + 2 * N_A
    bnd1 = 1.0 / np.sqrt(in1)
    w1 = jax.random.uniform(k_w1, (HID, in1), minval=-bnd1, maxval=bnd1, dtype=jnp.float32)
    b1 = jax.random.uniform(k_b1, (HID,), minval=-bnd1, maxval=bnd1, dtype=jnp.float32)
    bnd2 = 1.0 / np.sqrt(HID)
    w2 = jax.random.uniform(k_w2, (1, HID), minval=-bnd2, maxval=bnd2, dtype=jnp.float32)
    b2 = jax.random.uniform(k_b2, (1,), minval=-bnd2, maxval=bnd2, dtype=jnp.float32)

    # --- check 1: small f32 problem (single grid step) ---
    m, Tx = 2, 8
    s_prev = jax.random.normal(k_s, (1, m, N_S), dtype=jnp.float32)
    a = jax.random.normal(k_a, (m, Tx, 2 * N_A), dtype=jnp.float32)
    out = jax.block_until_ready(attention_block(s_prev, a, w1, b1, w2, b2))
    ref = reference(s_prev, a, w1, b1, w2, b2)
    assert out.shape == (m, 1, 2 * N_A)
    np.testing.assert_allclose(np.asarray(out), np.asarray(ref), rtol=1e-5, atol=1e-5)

    # --- check 2: batched multi-step grid + bf16 storage of `a` (half the HBM traffic) ---
    m2, Tx2 = 48, 8
    s_prev2 = jax.random.normal(k_s, (1, m2, N_S), dtype=jnp.float32)
    a2 = jax.random.normal(k_a, (m2, Tx2, 2 * N_A), dtype=jnp.float32).astype(jnp.bfloat16)
    out2 = jax.block_until_ready(attention_block(s_prev2, a2, w1, b1, w2, b2, block_m=16))
    ref2 = reference(s_prev2, a2, w1, b1, w2, b2)
    assert out2.shape == (m2, 1, 2 * N_A)
    np.testing.assert_allclose(np.asarray(out2), np.asarray(ref2), rtol=1e-3, atol=1e-3)

    print("KERNEL_OK")
</pallas_src>

<mosaic_0001>
module attributes {stable_mosaic.version = 11 : i64} {
  func.func @attention_kernel(%arg0: i32, %arg1: memref<2x64xf32, #tpu.memory_space<vmem>>, %arg2: memref<2x8x64xf32, #tpu.memory_space<vmem>>, %arg3: memref<64x10xf32, #tpu.memory_space<vmem>>, %arg4: memref<64x10xf32, #tpu.memory_space<vmem>>, %arg5: memref<1x10xf32, #tpu.memory_space<vmem>>, %arg6: memref<1x10xf32, #tpu.memory_space<vmem>>, %arg7: memref<1xf32, #tpu.memory_space<smem>>, %arg8: memref<2x64xf32, #tpu.memory_space<vmem>>) attributes {dimension_semantics = [#tpu.dimension_semantics<parallel>], iteration_bounds = array<i64: 1>, scalar_prefetch = 0 : i64, scratch_operands = 0 : i64, tpu.core_type = #tpu.core_type<tc>, window_params = [{transform_indices = @transform_0, window_bounds = array<i64: 2, 64>}, {transform_indices = @transform_1, window_bounds = array<i64: 2, 8, 64>}, {pipeline_mode = #tpu.pipeline_mode<synchronous>, transform_indices = @transform_2, window_bounds = array<i64: 64, 10>}, {pipeline_mode = #tpu.pipeline_mode<synchronous>, transform_indices = @transform_3, window_bounds = array<i64: 64, 10>}, {pipeline_mode = #tpu.pipeline_mode<synchronous>, transform_indices = @transform_4, window_bounds = array<i64: 1, 10>}, {pipeline_mode = #tpu.pipeline_mode<synchronous>, transform_indices = @transform_5, window_bounds = array<i64: 1, 10>}, {transform_indices = @transform_6, window_bounds = array<i64: 1>}, {transform_indices = @transform_7, window_bounds = array<i64: 2, 64>}]} {
    %c0 = arith.constant 0 : index
    %c0_0 = arith.constant 0 : index
    %c0_1 = arith.constant 0 : index
    %0 = vector.load %arg2[%c0, %c0_0, %c0_1] : memref<2x8x64xf32, #tpu.memory_space<vmem>>, vector<2x8x64xf32>
    %c0_2 = arith.constant 0 : index
    %c0_3 = arith.constant 0 : index
    %1 = vector.load %arg1[%c0_2, %c0_3] : memref<2x64xf32, #tpu.memory_space<vmem>>, vector<2x64xf32>
    %c0_4 = arith.constant 0 : index
    %c0_5 = arith.constant 0 : index
    %2 = vector.load %arg3[%c0_4, %c0_5] : memref<64x10xf32, #tpu.memory_space<vmem>>, vector<64x10xf32>
    %cst = arith.constant dense<0.000000e+00> : vector<2x10xf32>
    %3 = tpu.matmul %1, %2, %cst {dimension_numbers = #tpu.dot_dimension_numbers<[1], [0], [0], [1], [0, 0, 1, 1], [], []>} : vector<2x64xf32>, vector<64x10xf32>, vector<2x10xf32> -> vector<2x10xf32>
    %c0_6 = arith.constant 0 : index
    %c0_7 = arith.constant 0 : index
    %4 = vector.load %arg5[%c0_6, %c0_7] : memref<1x10xf32, #tpu.memory_space<vmem>>, vector<1x10xf32>
    %5 = vector.broadcast %4 : vector<1x10xf32> to vector<2x10xf32>
    %6 = arith.addf %3, %5 : vector<2x10xf32>
    %7 = vector.shape_cast %0 : vector<2x8x64xf32> to vector<16x64xf32>
    %c0_8 = arith.constant 0 : index
    %c0_9 = arith.constant 0 : index
    %8 = vector.load %arg4[%c0_8, %c0_9] : memref<64x10xf32, #tpu.memory_space<vmem>>, vector<64x10xf32>
    %cst_10 = arith.constant dense<0.000000e+00> : vector<16x10xf32>
    %9 = tpu.matmul %7, %8, %cst_10 {dimension_numbers = #tpu.dot_dimension_numbers<[1], [0], [0], [1], [0, 0, 1, 1], [], []>} : vector<16x64xf32>, vector<64x10xf32>, vector<16x10xf32> -> vector<16x10xf32>
    %10 = vector.shape_cast %9 : vector<16x10xf32> to vector<2x8x10xf32>
    %11 = vector.shape_cast %6 : vector<2x10xf32> to vector<2x1x10xf32>
    %12 = vector.broadcast %11 : vector<2x1x10xf32> to vector<2x8x10xf32>
    %13 = arith.addf %10, %12 : vector<2x8x10xf32>
    %14 = math.tanh %13 : vector<2x8x10xf32>
    %c0_11 = arith.constant 0 : index
    %c0_12 = arith.constant 0 : index
    %15 = vector.load %arg6[%c0_11, %c0_12] : memref<1x10xf32, #tpu.memory_space<vmem>>, vector<1x10xf32>
    %16 = vector.shape_cast %15 : vector<1x10xf32> to vector<1x1x10xf32>
    %17 = vector.broadcast %16 : vector<1x1x10xf32> to vector<2x8x10xf32>
    %18 = arith.mulf %14, %17 : vector<2x8x10xf32>
    %cst_13 = arith.constant dense<0.000000e+00> : vector<2x8xf32>
    %19 = vector.multi_reduction <add>, %18, %cst_13 [2] : vector<2x8x10xf32> to vector<2x8xf32>
    %20 = vector.shape_cast %19 : vector<2x8xf32> to vector<2x8x1xf32>
    %c0_14 = arith.constant 0 : index
    %21 = memref.load %arg7[%c0_14] : memref<1xf32, #tpu.memory_space<smem>>
    %22 = vector.broadcast %21 : f32 to vector<2x8x1xf32>
    %23 = arith.addf %20, %22 : vector<2x8x1xf32>
    %cst_15 = arith.constant 0.000000e+00 : f32
    %24 = vector.broadcast %cst_15 : f32 to vector<2x8x1xf32>
    %25 = arith.maximumf %23, %24 : vector<2x8x1xf32>
    %cst_16 = arith.constant dense<0xFF800000> : vector<2x8xf32>
    %26 = vector.multi_reduction <maximumf>, %25, %cst_16 [2] : vector<2x8x1xf32> to vector<2x8xf32>
    %27 = vector.shape_cast %26 : vector<2x8xf32> to vector<2x8x1xf32>
    %28 = arith.subf %25, %27 : vector<2x8x1xf32>
    %29 = math.exp %28 : vector<2x8x1xf32>
    %cst_17 = arith.constant dense<0.000000e+00> : vector<2x8xf32>
    %30 = vector.multi_reduction <add>, %29, %cst_17 [2] : vector<2x8x1xf32> to vector<2x8xf32>
    %31 = vector.shape_cast %30 : vector<2x8xf32> to vector<2x8x1xf32>
    %32 = arith.divf %29, %31 : vector<2x8x1xf32>
    %33 = vector.broadcast %32 : vector<2x8x1xf32> to vector<2x8x64xf32>
    %34 = arith.mulf %33, %0 : vector<2x8x64xf32>
    %cst_18 = arith.constant dense<0.000000e+00> : vector<2x64xf32>
    %35 = vector.multi_reduction <add>, %34, %cst_18 [1] : vector<2x8x64xf32> to vector<2x64xf32>
    %c0_19 = arith.constant 0 : index
    %c0_20 = arith.constant 0 : index
    %36 = vector.load %arg8[%c0_19, %c0_20] : memref<2x64xf32, #tpu.memory_space<vmem>>, vector<2x64xf32>
    tpu.vector_store %arg8[%c0_19, %c0_20], %35 {strides = array<i32>} : memref<2x64xf32, #tpu.memory_space<vmem>>, vector<2x64xf32>,
    return
  }
  func.func @transform_0(%arg0: i32) -> (i32, i32) {
    %c0_i32 = arith.constant 0 : i32
    %c0_i32_0 = arith.constant 0 : i32
    return %arg0, %c0_i32 : i32, i32
  }
  func.func @transform_1(%arg0: i32) -> (i32, i32, i32) {
    %c0_i32 = arith.constant 0 : i32
    %c0_i32_0 = arith.constant 0 : i32
    %c0_i32_1 = arith.constant 0 : i32
    return %arg0, %c0_i32, %c0_i32_0 : i32, i32, i32
  }
  func.func @transform_2(%arg0: i32) -> (i32, i32) {
    %c0_i32 = arith.constant 0 : i32
    %c0_i32_0 = arith.constant 0 : i32
    %c0_i32_1 = arith.constant 0 : i32
    return %c0_i32, %c0_i32_0 : i32, i32
  }
  func.func @transform_3(%arg0: i32) -> (i32, i32) {
    %c0_i32 = arith.constant 0 : i32
    %c0_i32_0 = arith.constant 0 : i32
    %c0_i32_1 = arith.constant 0 : i32
    return %c0_i32, %c0_i32_0 : i32, i32
  }
  func.func @transform_4(%arg0: i32) -> (i32, i32) {
    %c0_i32 = arith.constant 0 : i32
    %c0_i32_0 = arith.constant 0 : i32
    %c0_i32_1 = arith.constant 0 : i32
    return %c0_i32, %c0_i32_0 : i32, i32
  }
  func.func @transform_5(%arg0: i32) -> (i32, i32) {
    %c0_i32 = arith.constant 0 : i32
    %c0_i32_0 = arith.constant 0 : i32
    %c0_i32_1 = arith.constant 0 : i32
    return %c0_i32, %c0_i32_0 : i32, i32
  }
  func.func @transform_6(%arg0: i32) -> i32 {
    %c0_i32 = arith.constant 0 : i32
    %c0_i32_0 = arith.constant 0 : i32
    return %c0_i32 : i32
  }
  func.func @transform_7(%arg0: i32) -> (i32, i32) {
    %c0_i32 = arith.constant 0 : i32
    %c0_i32_0 = arith.constant 0 : i32
    return %arg0, %c0_i32 : i32, i32
  }
}

</mosaic_0001>

<bundles_post_ra>
// kernel: tpu_custom_call.1
= control target key start
LH: loop header
LB: loop body
LE: loop exit
PB: predicated region body
PF: predicated region fallthrough
CT: control target
= control target key end

     0   :  { %v448_v3 = vmov 0.0|0.0   ;;  %vm449_vm0 = vmmov 0   ;;  %v450_v8 = vmov 0.0   ;;  %vm46_vm1 = vcmask 523264   ;;  %s580_s0 = inlined_call_operand.vmem [shape: f32[2,64], index: 0, kind: input, shape index: {}]   ;;  %s581_s1 = inlined_call_operand.vmem [shape: f32[2,8,64], index: 1, kind: input, shape index: {}]   ;;  %s582_s2 = inlined_call_operand.vmem [shape: f32[64,10], index: 2, kind: input, shape index: {}]   ;;  %s583_s3 = inlined_call_operand.vmem [shape: f32[64,10], index: 3, kind: input, shape index: {}]   ;;  %s584_s4 = inlined_call_operand.vmem [shape: f32[1,10], index: 4, kind: input, shape index: {}]   ;;  %s585_s5 = inlined_call_operand.vmem [shape: f32[1,10], index: 5, kind: input, shape index: {}]   ;;  %s586_s6 = inlined_call_operand.<no memory space> [shape: f32[1], index: 6, kind: input, shape index: {}]   ;;  %s587_s7 = inlined_call_operand.hbm [shape: f32[2,64], index: 7, kind: output, shape index: {}]  }
   0x1   :  { %v31_v0 = vld [vmem:[%s582_s2] sm:$0xff]  ;;  %v32_v1 = vld [vmem:[%s582_s2 + $0x8] sm:$0xff]  ;;  %v33_v2 = vld [vmem:[%s582_s2 + $0x10] sm:$0xff]  ;;  %379 = vmatprep.subr.bf16.mxu0 %v448_v3  ;;  %357 = vmatprep.mubr.msk.f32.mxu0 %vm449_vm0, %v450_v8 }
   0x2   :  { %v380_v4 = vpack.c.bf16 %v32_v1, %v31_v0  ;;  %v34_v5 = vld [vmem:[%s582_s2 + $0x18] sm:$0xff]  ;;  %v120_v6 = vld [vmem:[%s583_s3] sm:$0xff]  ;;  %v121_v7 = vld [vmem:[%s583_s3 + $0x8] sm:$0xff] }
   0x3   :  { %v391_v9 = vpack.c.bf16 %v121_v7, %v120_v6  ;;  %v122_v10 = vld [vmem:[%s583_s3 + $0x10] sm:$0xff]  ;;  %v383_v11 = vpack.c.bf16 %v34_v5, %v33_v2  ;;  %v35_v12 = vld [vmem:[%s582_s2 + $0x20] sm:$0xff]  ;;  %v123_v13 = vld [vmem:[%s583_s3 + $0x18] sm:$0xff] }
   0x4   :  { %381 = vmatpush3.bf16.msra.mxu0 %v380_v4  ;;  %v36_v14 = vld [vmem:[%s582_s2 + $0x28] sm:$0xff]  ;;  %v395_v15 = vpack.c.bf16 %v123_v13, %v122_v10  ;;  %v124_v16 = vld [vmem:[%s583_s3 + $0x20] sm:$0xff] }
   0x5   :  { %382 = vmatprep.subr.bf16.mxu0 %v448_v3  ;;  %392 = vmatprep.subr.bf16.mxu1 %v391_v9  ;;  %v125_v17 = vld [vmem:[%s583_s3 + $0x28] sm:$0xff]  ;;  %v532_v18 = vld [vmem:[%s581_s1] sm:$0xff] }
   0x6   :  { %394 = vmatpush3.bf16.msra.mxu1 %v391_v9  ;;  %v399_v19 = vpack.c.bf16 %v125_v17, %v124_v16  ;;  %376 = vmatprep.mubr.msk.f32.mxu1 %vm46_vm1, %v532_v18 }
   0x7   :  { %396 = vmatprep.subr.bf16.mxu1 %v395_v15 }
   0x8   :  { %13 = vsyncpa [#allocation4], 0  ;;  %384 = vmatpush3.bf16.msra.mxu0 %v383_v11  ;;  %v386_v20 = vpack.c.bf16 %v36_v14, %v35_v12  ;;  %v126_v21 = vld [vmem:[%s583_s3 + $0x30] sm:$0xff]  ;;  %v127_v22 = vld [vmem:[%s583_s3 + $0x38] sm:$0xff]  ;;  %v451_v29 = vmov 1966171168   ;;  %v213_v31 = vlaneseq  ;;  %v263_v57 = vstv %s586_s6 }
   0x9   :  { %385 = vmatprep.subr.bf16.mxu0 %v448_v3  ;;  %v37_v23 = vld [vmem:[%s582_s2 + $0x30] sm:$0xff]  ;;  %v38_v24 = vld [vmem:[%s582_s2 + $0x38] sm:$0xff]  ;;  %v403_v25 = vpack.c.bf16 %v127_v22, %v126_v21  ;;  %v30_v27 = vld [vmem:[%s580_s0] sm:$0x3]  ;;  %v211_v30 = vunpack.c.l.s4 %v451_v29  ;;  %vm255_vm2 = vcmask 80896   ;;  %vm298_vm3 = vcmask 1041409  }
   0xa   :  { %398 = vmatpush3.bf16.msra.mxu1 %v395_v15  ;;  %v389_v26 = vpack.c.bf16 %v38_v24, %v37_v23  ;;  %v29_v28 = vld [vmem:[%s581_s1 + $0x8] sm:$0xff]  ;;  %v214_v33 = vshrl.u32 %v213_v31, 7  ;;  %v317_v34 = vld [vmem:[%s584_s4] ss:$0 sm:$0xff]  ;;  %vm301_vm4 = vcmask 517120  }
   0xb   :  { %400 = vmatprep.subr.bf16.mxu1 %v399_v19  ;;  %v212_v32 = vunpack.c.0.s8 %v211_v30  ;;  %v321_v50 = vld [vmem:[%s585_s5] ss:$0 sm:$0xff]  ;;  %s452_s5 = smov [#allocation3]  }
   0xc   :  { %387 = vmatpush3.bf16.msra.mxu0 %v386_v20  ;;  %v234_v41 = vsub.s32 0, %v214_v33  ;;  %s309_s6 = sshll.u32 %s452_s5, 4  ;;  %s310_s6 = int_to_ptr.vmem [resolvable:$true] %s309_s6 }
   0xd   :  { %388 = vmatprep.subr.bf16.mxu0 %v448_v3  ;;  %v215_v35 = vsub.s32 %v212_v32, %v214_v33  ;;  %s424_s17 = scalar_lea.vmem %s310_s6, 32  ;;  %p429_p1 = scmp.lt.s32.totalorder %s310_s6, %s310_s6 }
   0xe   :  { %402 = vmatpush3.bf16.msra.mxu1 %v399_v19  ;;  %p425_p0 = scmp.ne.s32.totalorder %s310_s6, %s424_s17  ;;  %p430_p2 = scmp.lt.s32.totalorder %s424_s17, %s424_s17 }
   0xf   :  { %404 = vmatprep.subr.bf16.mxu1 %v403_v25 }
  0x10   :  { %390 = vmatpush3.bf16.msra.mxu0 %v389_v26  ;;  %p431_p3 = por %p430_p2, %p429_p1 }
  0x12   :  { %406 = vmatpush3.bf16.msra.mxu1 %v403_v25  ;;  %p432_p4 = pnand %p431_p3, %p425_p0 }
  0x13   :  { %358 = vmatmul.mubr.msk.f32.vlgmr.msra.gmra.mrb[0].mxu0 %vm46_vm1, %v30_v27 }
  0x15   :  { %377 = vmatmul.mubr.msk.f32.vlgmr.msra.gmra.mrb[0].mxu1 %vm46_vm1, %v29_v28 }
  0xe6   :  { %v116_v36 = vpop.f32.mrb[0].mxu0 }
  0xe7   :  { %v117_v37 = vadd.f32 %v317_v34, %v116_v36  ;;  %v359_v38 = vpop.f32.mrb[1].mxu0 }
  0xe8   :  { %v378_v39 = vpop.f32.mrb[0].mxu1 }
  0xe9   :  { %v216_v40 = vrot.slane %v117_v37, %v215_v35  ;;  %v200_v42 = vpop.f32.mrb[1].mxu1 }
  0xeb   :  { %v217_v43 = vcombine.high %v216_v40, %v216_v40  ;;  %v224_v44 = vrot.slane %v216_v40, %v215_v35 }
  0xed   :  { %v231_v45 = vrot.slane %v217_v43, %v215_v35  ;;  %v235_v46 = vrot.slane %v224_v44, %v234_v41 }
  0xef   :  { %v239_v47 = vrot.slane %v231_v45, %v234_v41  ;;  %v242_v48 = vadd.f32 %v235_v46, %v200_v42 }
  0xf1   :  { %v243_v49 = vadd.f32 %v378_v39, %v239_v47  ;;  %412 = vtanh.f32 %v242_v48 }
  0xf3   :  { %414 = vtanh.f32 %v243_v49 }
  0xfb   :  { %v413_v51 = vpop.eup %412 }
  0xfc   :  { %v253_v52 = vmul.f32 %v413_v51, %v321_v50 }
  0xfd   :  { %v415_v53 = vpop.eup %414 }
  0xfe   :  { %v256_v54 = vsel %vm255_vm2, %v253_v52, 0.0  ;;  %v254_v55 = vmul.f32 %v415_v53, %v321_v50 }
  0xff   :  { %257 = vadd.xlane.f32.xlu0 %v256_v54 }
 0x100   :  { %v259_v56 = vsel %vm255_vm2, %v254_v55, 0.0 }
 0x103   :  { %260 = vadd.xlane.f32.xlu0 %v259_v56 }
 0x18c   :  { %v258_v58 = vpop.xlane.xlu0 %257 }
 0x18d   :  { %v264_v59 = vadd.f32 %v263_v57, %v258_v58 }
 0x18f   :  { %v266_v60 = vmax.f32 %v264_v59, 0.0 }
 0x190   :  { %v261_v61 = vpop.xlane.xlu0 %260 }
 0x191   :  { %v268_v62 = vsub.f32 %v266_v60, %v266_v60  ;;  %v265_v63 = vadd.f32 %v263_v57, %v261_v61 }
 0x193   :  { %v270_v0 = vmul.f32 1.442695, %v268_v62  ;;  %v267_v1 = vmax.f32 %v265_v63, 0.0 }
 0x195   :  { %416 = vpow2.f32 %v270_v0  ;;  %v269_v2 = vsub.f32 %v267_v1, %v267_v1 }
 0x197   :  { %v272_v3 = vmul.f32 1.442695, %v269_v2 }
 0x199   :  { %418 = vpow2.f32 %v272_v3 }
 0x19f   :  { %v417_v4 = vpop.eup %416 }
 0x1a0   :  { %420 = vrcp.f32 %v417_v4 }
 0x1a3   :  { %v419_v5 = vpop.eup %418 }
 0x1a4   :  { %422 = vrcp.f32 %v419_v5 }
 0x1aa   :  { %v421_v6 = vpop.eup %420 }
 0x1ab   :  { %v277_v7 = vmul.f32 %v421_v6, %v417_v4 }
 0x1ad   :  { %v280_v8 = vmul.f32 %v277_v7, %v532_v18 }
 0x1ae   :  { %v423_v9 = vpop.eup %422 }
 0x1af   :  { %v279_v10 = vmul.f32 %v423_v9, %v419_v5  ;;  %v282_v11 = vsel %vm46_vm1, %v280_v8, 0.0 }
 0x1b0   :  { %v283_v12 = vrot.slane %v282_v11, 4 }
 0x1b1   :  { %v281_v13 = vmul.f32 %v279_v10, %v29_v28 }
 0x1b2   :  { %v284_v14 = vadd.f32 %v283_v12, %v282_v11 }
 0x1b3   :  { %v289_v15 = vsel %vm46_vm1, %v281_v13, 0.0 }
 0x1b4   :  { %v285_v16 = vrot.slane %v284_v14, 2  ;;  %v290_v17 = vrot.slane %v289_v15, 4 }
 0x1b6   :  { %v286_v19 = vadd.f32 %v285_v16, %v284_v14  ;;  %v291_v20 = vadd.f32 %v290_v17, %v289_v15 }
 0x1b8   :  { %v292_v21 = vrot.slane %v291_v20, 2  ;;  %v287_v22 = vrot.slane %v286_v19, 1 }
 0x1ba   :  { %v293_v23 = vadd.f32 %v292_v21, %v291_v20  ;;  %v288_v18 = vadd.f32 %v287_v22, %v286_v19 }
 0x1bc   :  { %v294_v24 = vrot.slane %v293_v23, 1 }
 0x1be   :  { %v295_v25 = vadd.f32 %v294_v24, %v293_v23 }
 0x1c0   :  { %v299_v26 = vsel %vm298_vm3, %v295_v25, %v288_v18 }
 0x1c1   :  { %302 = vst.msk [vmem:[#allocation3] sm:$0x3] %vm301_vm4, %v299_v26 }
 0x1c2   :  { %435 = shalt.err (!%p432_p4)
}
 0x1c3   :  { %s436_s20 = scalar_lea.hbm %s587_s7, 32 }
 0x1c4   :  { %p437_p5 = scmp.ne.s32.totalorder %s587_s7, %s436_s20  ;;  %p440_p6 = scmp.lt.u32.totalorder %s436_s20, %s587_s7 }
 0x1c6   :  { %p442_p7 = pnand %p440_p6, %p437_p5 }
 0x1c8   :  { %445 = shalt.err (!%p442_p7)
}
 0x1c9   :  { %312 = dma.vmem_to_hbm [thread:$0]  %s310_s6, 32, %s587_s7, [#allocation4]  }
 0x1ca   :  { %446 = dma.done.wait [#allocation4], 32  }
 0x1cb   :  { %447 = vsyncadd [#allocation4], 4294967264 }
 0x1cc   :  { %316 = vsyncpa [#allocation4], 1 }

</bundles_post_ra>
